<compile_context>
chip_gen: v7x
topology: tpu7x:2x2x1
jax: 0.10.0
libtpu: 0.0.40
codegen_flags: <defaults>
</compile_context>

<pallas_src>
import functools

import jax
import jax.numpy as jnp
from jax.experimental import pallas as pl
from jax.experimental.pallas import tpu as pltpu

NEG_SLOPE = 0.01  # torch.nn.LeakyReLU default


def _leaky_relu(v):
    return jnp.where(v >= 0, v, NEG_SLOPE * v)


def _round_up(x, m):
    return (x + m - 1) // m * m


def _siamese_kernel(x_ref,                                     # [2, TM, Kp]
                    w1_ref, b1_ref, w2_ref, b2_ref,            # shared branch MLP
                    wa0_ref, wa1_ref, ba_ref, wb_ref, bb_ref,  # head MLP
                    y_ref,                                     # [TM, 2]
                    o_ref):                                    # [2, TM, branch_out]
    """One batch tile.  First TM rows of the stacked slab are channel 0, the
    next TM rows are channel 1, so each shared layer is a single MXU pass."""
    tm = y_ref.shape[0]
    kp = x_ref.shape[-1]
    bo = o_ref.shape[-1]

    # [2, TM, Kp] -> [2*TM, Kp]; TM % 8 == 0 and Kp % 128 == 0, so this merge
    # of leading dims is tile-aligned (pure metadata, no relayout).
    xs = x_ref[...].reshape(2 * tm, kp)

    # Shared inner model (both branches in one MXU pass per layer).
    h = jnp.dot(xs, w1_ref[...], preferred_element_type=jnp.float32) + b1_ref[...]
    h = _leaky_relu(h)
    o = jnp.dot(h, w2_ref[...], preferred_element_type=jnp.float32) + b2_ref[...]  # [2*TM, bo]

    # Head: LeakyReLU -> Linear(20, 20) -> LeakyReLU -> Linear(20, 2).
    # concat(o0, o1) @ Wa  ==  leaky(o0) @ Wa[:bo] + leaky(o1) @ Wa[bo:]
    # (LeakyReLU is elementwise), avoiding an unaligned lane concat.
    ol = _leaky_relu(o)
    y = (jnp.dot(ol[:tm], wa0_ref[...], preferred_element_type=jnp.float32)
         + jnp.dot(ol[tm:], wa1_ref[...], preferred_element_type=jnp.float32)
         + ba_ref[...])
    y = _leaky_relu(y)
    y = jnp.dot(y, wb_ref[...], preferred_element_type=jnp.float32) + bb_ref[...]   # [TM, 2]

    y_ref[...] = y
    # [2*TM, bo] -> [2, TM, bo] is the inverse tile-aligned split (TM % 8 == 0).
    o_ref[...] = o.reshape(2, tm, bo)


@functools.partial(jax.jit, static_argnames=("block_m",))
def deep_siamese_forward(x_in, params, block_m=512):
    """x_in: [B, C>=2, H, W] float32 (NCHW, like the PyTorch module).

    Returns [B, 2 + 2*branch_out] = concat(mlp_out, out_0, out_1), matching
    DeepSiameseNet.forward.
    """
    w1, b1, w2, b2, wa, ba, wb, bb = params
    B, C, H, W = x_in.shape
    assert C >= 2, "DeepSiameseNet needs at least 2 input channels"

    hw = H * W
    fm = w1.shape[1]
    branch_out = w2.shape[1]
    n_hidden = wa.shape[1]

    kp = max(128, _round_up(hw, 128))                 # lane-pad K: 196 -> 256
    tm = min(block_m, max(8, _round_up(B, 8)))        # batch tile, multiple of 8
    bp = _round_up(B, tm)
    n_tiles = bp // tm

    # Channel split (narrow(1,0,1)/narrow(1,1,1)) + flatten + channel-major
    # stack + K/batch zero-pad, all fused by XLA into one prep op.
    x2 = x_in[:, :2].reshape(B, 2, hw)
    x2 = jnp.transpose(x2, (1, 0, 2))                               # [2, B, HW]
    x2 = jnp.pad(x2, ((0, 0), (0, bp - B), (0, kp - hw)))           # [2, Bp, Kp]

    w1p = jnp.pad(w1, ((0, kp - hw), (0, 0)))                       # [Kp, Fm]
    wa0, wa1 = wa[:branch_out], wa[branch_out:]                     # split head W

    const = lambda i: (0, 0)  # weights: same block every step -> DMA'd once
    y, o = pl.pallas_call(
        _siamese_kernel,
        out_shape=(
            jax.ShapeDtypeStruct((bp, 2), jnp.float32),
            jax.ShapeDtypeStruct((2, bp, branch_out), jnp.float32),
        ),
        grid=(n_tiles,),
        in_specs=[
            pl.BlockSpec((2, tm, kp), lambda i: (0, i, 0)),   # stacked images
            pl.BlockSpec((kp, fm), const),
            pl.BlockSpec((1, fm), const),
            pl.BlockSpec((fm, branch_out), const),
            pl.BlockSpec((1, branch_out), const),
            pl.BlockSpec((branch_out, n_hidden), const),
            pl.BlockSpec((branch_out, n_hidden), const),
            pl.BlockSpec((1, n_hidden), const),
            pl.BlockSpec((n_hidden, 2), const),
            pl.BlockSpec((1, 2), const),
        ],
        out_specs=(
            pl.BlockSpec((tm, 2), lambda i: (i, 0)),
            pl.BlockSpec((2, tm, branch_out), lambda i: (0, i, 0)),
        ),
        compiler_params=pltpu.CompilerParams(
            dimension_semantics=("parallel",),        # v7x: split batch over 2 TCs
            vmem_limit_bytes=32 * 1024 * 1024,        # tiles sized far below this
        ),
    )(x2, w1p, b1, w2, b2, wa0, wa1, ba, wb, bb)

    # Tiny final concat (22 lanes/row) is cheapest as a fused XLA op outside
    # the kernel; padded batch rows are dropped here.
    return jnp.concatenate([y[:B], o[0, :B], o[1, :B]], axis=1)


def init_params(key, hw, fm=32, branch_out=10, in_features=20, n_hidden=20):
    """Deterministic synthetic parameters (weights stored [in, out])."""
    ks = jax.random.split(key, 8)
    scale = 0.1
    w1 = scale * jax.random.normal(ks[0], (hw, fm), jnp.float32)
    b1 = scale * jax.random.normal(ks[1], (1, fm), jnp.float32)
    w2 = scale * jax.random.normal(ks[2], (fm, branch_out), jnp.float32)
    b2 = scale * jax.random.normal(ks[3], (1, branch_out), jnp.float32)
    wa = scale * jax.random.normal(ks[4], (in_features, n_hidden), jnp.float32)
    ba = scale * jax.random.normal(ks[5], (1, n_hidden), jnp.float32)
    wb = scale * jax.random.normal(ks[6], (n_hidden, 2), jnp.float32)
    bb = scale * jax.random.normal(ks[7], (1, 2), jnp.float32)
    return (w1, b1, w2, b2, wa, ba, wb, bb)


def reference_forward(x_in, params):
    """Pure-JAX reference of the same forward (for a sanity check)."""
    w1, b1, w2, b2, wa, ba, wb, bb = params
    B, _, H, W = x_in.shape
    leaky = lambda v: jnp.where(v >= 0, v, NEG_SLOPE * v)

    def branch(x):
        h = leaky(x @ w1 + b1)
        return h @ w2 + b2

    out0 = branch(x_in[:, 0].reshape(B, H * W))
    out1 = branch(x_in[:, 1].reshape(B, H * W))
    cat = jnp.concatenate([out0, out1], axis=1)
    y = leaky(cat) @ wa + ba
    y = leaky(y) @ wb + bb
    return jnp.concatenate([y, out0, out1], axis=1)


if __name__ == "__main__":
    key = jax.random.PRNGKey(0)
    k_x, k_p = jax.random.split(key)

    B, C, H, W = 4, 2, 14, 14                       # MNIST-pair-like input
    x_in = jax.random.normal(k_x, (B, C, H, W), jnp.float32)
    params = init_params(k_p, hw=H * W)

    out = deep_siamese_forward(x_in, params)
    out = jax.block_until_ready(out)

    ref = reference_forward(x_in, params)
    assert out.shape == (B, 22), out.shape
    assert jnp.allclose(out, ref, atol=1e-4, rtol=1e-4), "mismatch vs reference"

    print("KERNEL_OK")
</pallas_src>

<mosaic_0001>
module attributes {stable_mosaic.version = 11 : i64} {
  func.func @_siamese_kernel(%arg0: i32, %arg1: memref<2x8x256xf32, #tpu.memory_space<vmem>>, %arg2: memref<256x32xf32, #tpu.memory_space<vmem>>, %arg3: memref<1x32xf32, #tpu.memory_space<vmem>>, %arg4: memref<32x10xf32, #tpu.memory_space<vmem>>, %arg5: memref<1x10xf32, #tpu.memory_space<vmem>>, %arg6: memref<10x20xf32, #tpu.memory_space<vmem>>, %arg7: memref<10x20xf32, #tpu.memory_space<vmem>>, %arg8: memref<1x20xf32, #tpu.memory_space<vmem>>, %arg9: memref<20x2xf32, #tpu.memory_space<vmem>>, %arg10: memref<1x2xf32, #tpu.memory_space<vmem>>, %arg11: memref<8x2xf32, #tpu.memory_space<vmem>>, %arg12: memref<2x8x10xf32, #tpu.memory_space<vmem>>) attributes {dimension_semantics = [#tpu.dimension_semantics<parallel>], iteration_bounds = array<i64: 1>, scalar_prefetch = 0 : i64, scratch_operands = 0 : i64, tpu.core_type = #tpu.core_type<tc>, window_params = [{transform_indices = @transform_0, window_bounds = array<i64: 2, 8, 256>}, {pipeline_mode = #tpu.pipeline_mode<synchronous>, transform_indices = @transform_1, window_bounds = array<i64: 256, 32>}, {pipeline_mode = #tpu.pipeline_mode<synchronous>, transform_indices = @transform_2, window_bounds = array<i64: 1, 32>}, {pipeline_mode = #tpu.pipeline_mode<synchronous>, transform_indices = @transform_3, window_bounds = array<i64: 32, 10>}, {pipeline_mode = #tpu.pipeline_mode<synchronous>, transform_indices = @transform_4, window_bounds = array<i64: 1, 10>}, {pipeline_mode = #tpu.pipeline_mode<synchronous>, transform_indices = @transform_5, window_bounds = array<i64: 10, 20>}, {pipeline_mode = #tpu.pipeline_mode<synchronous>, transform_indices = @transform_6, window_bounds = array<i64: 10, 20>}, {pipeline_mode = #tpu.pipeline_mode<synchronous>, transform_indices = @transform_7, window_bounds = array<i64: 1, 20>}, {pipeline_mode = #tpu.pipeline_mode<synchronous>, transform_indices = @transform_8, window_bounds = array<i64: 20, 2>}, {pipeline_mode = #tpu.pipeline_mode<synchronous>, transform_indices = @transform_9, window_bounds = array<i64: 1, 2>}, {transform_indices = @transform_10, window_bounds = array<i64: 8, 2>}, {transform_indices = @transform_11, window_bounds = array<i64: 2, 8, 10>}]} {
    %c0 = arith.constant 0 : index
    %c0_0 = arith.constant 0 : index
    %c0_1 = arith.constant 0 : index
    %0 = vector.load %arg1[%c0, %c0_0, %c0_1] : memref<2x8x256xf32, #tpu.memory_space<vmem>>, vector<2x8x256xf32>
    %1 = vector.shape_cast %0 : vector<2x8x256xf32> to vector<16x256xf32>
    %c0_2 = arith.constant 0 : index
    %c0_3 = arith.constant 0 : index
    %2 = vector.load %arg2[%c0_2, %c0_3] : memref<256x32xf32, #tpu.memory_space<vmem>>, vector<256x32xf32>
    %cst = arith.constant dense<0.000000e+00> : vector<16x32xf32>
    %3 = tpu.matmul %1, %2, %cst {dimension_numbers = #tpu.dot_dimension_numbers<[1], [0], [0], [1], [0, 0, 1, 1], [], []>} : vector<16x256xf32>, vector<256x32xf32>, vector<16x32xf32> -> vector<16x32xf32>
    %c0_4 = arith.constant 0 : index
    %c0_5 = arith.constant 0 : index
    %4 = vector.load %arg3[%c0_4, %c0_5] : memref<1x32xf32, #tpu.memory_space<vmem>>, vector<1x32xf32>
    %5 = vector.broadcast %4 : vector<1x32xf32> to vector<16x32xf32>
    %6 = arith.addf %3, %5 : vector<16x32xf32>
    %cst_6 = arith.constant 0.000000e+00 : f32
    %7 = vector.broadcast %cst_6 : f32 to vector<16x32xf32>
    %8 = arith.cmpf oge, %6, %7 : vector<16x32xf32>
    %cst_7 = arith.constant 0.00999999977 : f32
    %9 = vector.broadcast %cst_7 : f32 to vector<16x32xf32>
    %10 = arith.mulf %9, %6 : vector<16x32xf32>
    %11 = arith.select %8, %6, %10 : vector<16x32xi1>, vector<16x32xf32>
    %c0_8 = arith.constant 0 : index
    %c0_9 = arith.constant 0 : index
    %12 = vector.load %arg4[%c0_8, %c0_9] : memref<32x10xf32, #tpu.memory_space<vmem>>, vector<32x10xf32>
    %cst_10 = arith.constant dense<0.000000e+00> : vector<16x10xf32>
    %13 = tpu.matmul %11, %12, %cst_10 {dimension_numbers = #tpu.dot_dimension_numbers<[1], [0], [0], [1], [0, 0, 1, 1], [], []>} : vector<16x32xf32>, vector<32x10xf32>, vector<16x10xf32> -> vector<16x10xf32>
    %c0_11 = arith.constant 0 : index
    %c0_12 = arith.constant 0 : index
    %14 = vector.load %arg5[%c0_11, %c0_12] : memref<1x10xf32, #tpu.memory_space<vmem>>, vector<1x10xf32>
    %15 = vector.broadcast %14 : vector<1x10xf32> to vector<16x10xf32>
    %16 = arith.addf %13, %15 : vector<16x10xf32>
    %cst_13 = arith.constant 0.000000e+00 : f32
    %17 = vector.broadcast %cst_13 : f32 to vector<16x10xf32>
    %18 = arith.cmpf oge, %16, %17 : vector<16x10xf32>
    %cst_14 = arith.constant 0.00999999977 : f32
    %19 = vector.broadcast %cst_14 : f32 to vector<16x10xf32>
    %20 = arith.mulf %19, %16 : vector<16x10xf32>
    %21 = arith.select %18, %16, %20 : vector<16x10xi1>, vector<16x10xf32>
    %22 = vector.extract_strided_slice %21 {offsets = [0, 0], sizes = [8, 10], strides = [1, 1]} : vector<16x10xf32> to vector<8x10xf32>
    %c0_15 = arith.constant 0 : index
    %c0_16 = arith.constant 0 : index
    %23 = vector.load %arg6[%c0_15, %c0_16] : memref<10x20xf32, #tpu.memory_space<vmem>>, vector<10x20xf32>
    %cst_17 = arith.constant dense<0.000000e+00> : vector<8x20xf32>
    %24 = tpu.matmul %22, %23, %cst_17 {dimension_numbers = #tpu.dot_dimension_numbers<[1], [0], [0], [1], [0, 0, 1, 1], [], []>} : vector<8x10xf32>, vector<10x20xf32>, vector<8x20xf32> -> vector<8x20xf32>
    %25 = vector.extract_strided_slice %21 {offsets = [8, 0], sizes = [8, 10], strides = [1, 1]} : vector<16x10xf32> to vector<8x10xf32>
    %c0_18 = arith.constant 0 : index
    %c0_19 = arith.constant 0 : index
    %26 = vector.load %arg7[%c0_18, %c0_19] : memref<10x20xf32, #tpu.memory_space<vmem>>, vector<10x20xf32>
    %cst_20 = arith.constant dense<0.000000e+00> : vector<8x20xf32>
    %27 = tpu.matmul %25, %26, %cst_20 {dimension_numbers = #tpu.dot_dimension_numbers<[1], [0], [0], [1], [0, 0, 1, 1], [], []>} : vector<8x10xf32>, vector<10x20xf32>, vector<8x20xf32> -> vector<8x20xf32>
    %28 = arith.addf %24, %27 : vector<8x20xf32>
    %c0_21 = arith.constant 0 : index
    %c0_22 = arith.constant 0 : index
    %29 = vector.load %arg8[%c0_21, %c0_22] : memref<1x20xf32, #tpu.memory_space<vmem>>, vector<1x20xf32>
    %30 = vector.broadcast %29 : vector<1x20xf32> to vector<8x20xf32>
    %31 = arith.addf %28, %30 : vector<8x20xf32>
    %cst_23 = arith.constant 0.000000e+00 : f32
    %32 = vector.broadcast %cst_23 : f32 to vector<8x20xf32>
    %33 = arith.cmpf oge, %31, %32 : vector<8x20xf32>
    %cst_24 = arith.constant 0.00999999977 : f32
    %34 = vector.broadcast %cst_24 : f32 to vector<8x20xf32>
    %35 = arith.mulf %34, %31 : vector<8x20xf32>
    %36 = arith.select %33, %31, %35 : vector<8x20xi1>, vector<8x20xf32>
    %c0_25 = arith.constant 0 : index
    %c0_26 = arith.constant 0 : index
    %37 = vector.load %arg9[%c0_25, %c0_26] : memref<20x2xf32, #tpu.memory_space<vmem>>, vector<20x2xf32>
    %cst_27 = arith.constant dense<0.000000e+00> : vector<8x2xf32>
    %38 = tpu.matmul %36, %37, %cst_27 {dimension_numbers = #tpu.dot_dimension_numbers<[1], [0], [0], [1], [0, 0, 1, 1], [], []>} : vector<8x20xf32>, vector<20x2xf32>, vector<8x2xf32> -> vector<8x2xf32>
    %c0_28 = arith.constant 0 : index
    %c0_29 = arith.constant 0 : index
    %39 = vector.load %arg10[%c0_28, %c0_29] : memref<1x2xf32, #tpu.memory_space<vmem>>, vector<1x2xf32>
    %40 = vector.broadcast %39 : vector<1x2xf32> to vector<8x2xf32>
    %41 = arith.addf %38, %40 : vector<8x2xf32>
    %c0_30 = arith.constant 0 : index
    %c0_31 = arith.constant 0 : index
    %42 = vector.load %arg11[%c0_30, %c0_31] : memref<8x2xf32, #tpu.memory_space<vmem>>, vector<8x2xf32>
    tpu.vector_store %arg11[%c0_30, %c0_31], %41 {strides = array<i32>} : memref<8x2xf32, #tpu.memory_space<vmem>>, vector<8x2xf32>,
    %43 = vector.shape_cast %16 : vector<16x10xf32> to vector<2x8x10xf32>
    %c0_32 = arith.constant 0 : index
    %c0_33 = arith.constant 0 : index
    %c0_34 = arith.constant 0 : index
    %44 = vector.load %arg12[%c0_32, %c0_33, %c0_34] : memref<2x8x10xf32, #tpu.memory_space<vmem>>, vector<2x8x10xf32>
    tpu.vector_store %arg12[%c0_32, %c0_33, %c0_34], %43 {strides = array<i32>} : memref<2x8x10xf32, #tpu.memory_space<vmem>>, vector<2x8x10xf32>,
    return
  }
  func.func @transform_0(%arg0: i32) -> (i32, i32, i32) {
    %c0_i32 = arith.constant 0 : i32
    %c0_i32_0 = arith.constant 0 : i32
    %c0_i32_1 = arith.constant 0 : i32
    return %c0_i32, %arg0, %c0_i32_0 : i32, i32, i32
  }
  func.func @transform_1(%arg0: i32) -> (i32, i32) {
    %c0_i32 = arith.constant 0 : i32
    %c0_i32_0 = arith.constant 0 : i32
    %c0_i32_1 = arith.constant 0 : i32
    return %c0_i32, %c0_i32_0 : i32, i32
  }
  func.func @transform_2(%arg0: i32) -> (i32, i32) {
    %c0_i32 = arith.constant 0 : i32
    %c0_i32_0 = arith.constant 0 : i32
    %c0_i32_1 = arith.constant 0 : i32
    return %c0_i32, %c0_i32_0 : i32, i32
  }
  func.func @transform_3(%arg0: i32) -> (i32, i32) {
    %c0_i32 = arith.constant 0 : i32
    %c0_i32_0 = arith.constant 0 : i32
    %c0_i32_1 = arith.constant 0 : i32
    return %c0_i32, %c0_i32_0 : i32, i32
  }
  func.func @transform_4(%arg0: i32) -> (i32, i32) {
    %c0_i32 = arith.constant 0 : i32
    %c0_i32_0 = arith.constant 0 : i32
    %c0_i32_1 = arith.constant 0 : i32
    return %c0_i32, %c0_i32_0 : i32, i32
  }
  func.func @transform_5(%arg0: i32) -> (i32, i32) {
    %c0_i32 = arith.constant 0 : i32
    %c0_i32_0 = arith.constant 0 : i32
    %c0_i32_1 = arith.constant 0 : i32
    return %c0_i32, %c0_i32_0 : i32, i32
  }
  func.func @transform_6(%arg0: i32) -> (i32, i32) {
    %c0_i32 = arith.constant 0 : i32
    %c0_i32_0 = arith.constant 0 : i32
    %c0_i32_1 = arith.constant 0 : i32
    return %c0_i32, %c0_i32_0 : i32, i32
  }
  func.func @transform_7(%arg0: i32) -> (i32, i32) {
    %c0_i32 = arith.constant 0 : i32
    %c0_i32_0 = arith.constant 0 : i32
    %c0_i32_1 = arith.constant 0 : i32
    return %c0_i32, %c0_i32_0 : i32, i32
  }
  func.func @transform_8(%arg0: i32) -> (i32, i32) {
    %c0_i32 = arith.constant 0 : i32
    %c0_i32_0 = arith.constant 0 : i32
    %c0_i32_1 = arith.constant 0 : i32
    return %c0_i32, %c0_i32_0 : i32, i32
  }
  func.func @transform_9(%arg0: i32) -> (i32, i32) {
    %c0_i32 = arith.constant 0 : i32
    %c0_i32_0 = arith.constant 0 : i32
    %c0_i32_1 = arith.constant 0 : i32
    return %c0_i32, %c0_i32_0 : i32, i32
  }
  func.func @transform_10(%arg0: i32) -> (i32, i32) {
    %c0_i32 = arith.constant 0 : i32
    %c0_i32_0 = arith.constant 0 : i32
    return %arg0, %c0_i32 : i32, i32
  }
  func.func @transform_11(%arg0: i32) -> (i32, i32, i32) {
    %c0_i32 = arith.constant 0 : i32
    %c0_i32_0 = arith.constant 0 : i32
    %c0_i32_1 = arith.constant 0 : i32
    return %c0_i32, %arg0, %c0_i32_0 : i32, i32, i32
  }
}

</mosaic_0001>

<bundles_post_ra>
// kernel: deep_siamese_forward.1
= control target key start
LH: loop header
LB: loop body
LE: loop exit
PB: predicated region body
PF: predicated region fallthrough
CT: control target
= control target key end

     0   :  { %vm172_vm1 = vcmask 261120   ;;  %vm268_vm3 = vcmask 1041408   ;;  %vm685_vm4 = vmmov 1   ;;  %vm686_vm6 = vmmov 0   ;;  %s925_s1 = inlined_call_operand.vmem [shape: f32[256,32], index: 1, kind: input, shape index: {}]   ;;  %s926_s0 = inlined_call_operand.vmem [shape: f32[2,8,256], index: 0, kind: input, shape index: {}]   ;;  %s927_s3 = inlined_call_operand.vmem [shape: f32[32,10], index: 3, kind: input, shape index: {}]   ;;  %s928_s2 = inlined_call_operand.vmem [shape: f32[1,32], index: 2, kind: input, shape index: {}]   ;;  %s929_s6 = inlined_call_operand.vmem [shape: f32[10,20], index: 6, kind: input, shape index: {}]   ;;  %s930_s4 = inlined_call_operand.vmem [shape: f32[1,10], index: 4, kind: input, shape index: {}]   ;;  %s931_s5 = inlined_call_operand.vmem [shape: f32[10,20], index: 5, kind: input, shape index: {}]   ;;  %s932_s11 = inlined_call_operand.vmem [shape: f32[2,8,10], index: 11, kind: output, shape index: {1}]   ;;  %s933_s8 = inlined_call_operand.vmem [shape: f32[20,2], index: 8, kind: input, shape index: {}]   ;;  %s934_s7 = inlined_call_operand.vmem [shape: f32[1,20], index: 7, kind: input, shape index: {}]   ;;  %s935_s9 = inlined_call_operand.vmem [shape: f32[1,2], index: 9, kind: input, shape index: {}]   ;;  %s936_s10 = inlined_call_operand.vmem [shape: f32[8,2], index: 10, kind: output, shape index: {0}]  }
   0x1   :  { %v57_v0 = vld [vmem:[%s925_s1 + $0x80] sm:$0xff]  ;;  %v58_v1 = vld [vmem:[%s925_s1 + $0x88] sm:$0xff]  ;;  %v59_v5 = vld [vmem:[%s925_s1 + $0x90] sm:$0xff]  ;;  %vm264_vm7 = vcmask 80896   ;;  %vm443_vm10 = vcmask 1043456   ;;  %vm439_vm12 = vcmask 162816  }
   0x2   :  { %v41_v2 = vld [vmem:[%s925_s1] sm:$0xff]  ;;  %v629_v3 = vpack.c.bf16 %v58_v1, %v57_v0  ;;  %v42_v4 = vld [vmem:[%s925_s1 + $0x8] sm:$0xff]  ;;  %v60_v6 = vld [vmem:[%s925_s1 + $0x98] sm:$0xff]  ;;  %vm517_vm13 = vcmask 15360  }
   0x3   :  { %v631_v7 = vpack.c.bf16 %v42_v4, %v41_v2  ;;  %v633_v8 = vpack.c.bf16 %v60_v6, %v59_v5  ;;  %v43_v9 = vld [vmem:[%s925_s1 + $0x10] sm:$0xff]  ;;  %v44_v10 = vld [vmem:[%s925_s1 + $0x18] sm:$0xff]  ;;  %v61_v11 = vld [vmem:[%s925_s1 + $0xa0] sm:$0xff] }
   0x4   :  { %630 = vmatprep.subr.bf16.mxu0 %v629_v3  ;;  %v62_v12 = vld [vmem:[%s925_s1 + $0xa8] sm:$0xff]  ;;  %v635_v13 = vpack.c.bf16 %v44_v10, %v43_v9  ;;  %v45_v15 = vld [vmem:[%s925_s1 + $0x20] sm:$0xff]  ;;  %v63_v17 = vld [vmem:[%s925_s1 + $0xb0] sm:$0xff]  ;;  %v684_v10 = vmov 0.0|0.0  }
   0x5   :  { %632 = vmatpush3.bf16.msra.mxu0 %v631_v7  ;;  %v637_v14 = vpack.c.bf16 %v62_v12, %v61_v11  ;;  %v46_v16 = vld [vmem:[%s925_s1 + $0x28] sm:$0xff]  ;;  %v64_v18 = vld [vmem:[%s925_s1 + $0xb8] sm:$0xff]  ;;  %v47_v21 = vld [vmem:[%s925_s1 + $0x30] sm:$0xff]  ;;  %v687_v12 = vmov 0.0  }
   0x6   :  { %634 = vmatprep.subr.bf16.mxu0 %v633_v8  ;;  %v639_v19 = vpack.c.bf16 %v46_v16, %v45_v15  ;;  %v641_v20 = vpack.c.bf16 %v64_v18, %v63_v17  ;;  %v48_v22 = vld [vmem:[%s925_s1 + $0x38] sm:$0xff]  ;;  %v65_v23 = vld [vmem:[%s925_s1 + $0xc0] sm:$0xff]  ;;  %v66_v24 = vld [vmem:[%s925_s1 + $0xc8] sm:$0xff] }
   0x7   :  { %v38_v25 = vld [vmem:[%s926_s0 + $0x8] sm:$0xff]  ;;  %v643_v26 = vpack.c.bf16 %v48_v22, %v47_v21  ;;  %v645_v27 = vpack.c.bf16 %v66_v24, %v65_v23  ;;  %v49_v28 = vld [vmem:[%s925_s1 + $0x40] sm:$0xff]  ;;  %v67_v30 = vld [vmem:[%s925_s1 + $0xd0] sm:$0xff] }
   0x8   :  { %144 = vmatprep.mubr.f32.mxu0 %v38_v25  ;;  %v50_v29 = vld [vmem:[%s925_s1 + $0x48] sm:$0xff]  ;;  %v68_v31 = vld [vmem:[%s925_s1 + $0xd8] sm:$0xff]  ;;  %v51_v34 = vld [vmem:[%s925_s1 + $0x50] sm:$0xff] }
   0x9   :  { %636 = vmatpush3.bf16.msra.mxu0 %v635_v13  ;;  %v647_v32 = vpack.c.bf16 %v50_v29, %v49_v28  ;;  %v649_v33 = vpack.c.bf16 %v68_v31, %v67_v30  ;;  %v52_v35 = vld [vmem:[%s925_s1 + $0x58] sm:$0xff]  ;;  %v69_v36 = vld [vmem:[%s925_s1 + $0xe0] sm:$0xff]  ;;  %v70_v37 = vld [vmem:[%s925_s1 + $0xe8] sm:$0xff] }
   0xa   :  { %638 = vmatprep.subr.bf16.mxu0 %v637_v14  ;;  %v651_v38 = vpack.c.bf16 %v52_v35, %v51_v34  ;;  %v653_v39 = vpack.c.bf16 %v70_v37, %v69_v36  ;;  %v53_v40 = vld [vmem:[%s925_s1 + $0x60] sm:$0xff]  ;;  %v54_v41 = vld [vmem:[%s925_s1 + $0x68] sm:$0xff]  ;;  %v71_v42 = vld [vmem:[%s925_s1 + $0xf0] sm:$0xff] }
   0xb   :  { %v72_v43 = vld [vmem:[%s925_s1 + $0xf8] sm:$0xff]  ;;  %v655_v44 = vpack.c.bf16 %v54_v41, %v53_v40  ;;  %v55_v46 = vld [vmem:[%s925_s1 + $0x70] sm:$0xff]  ;;  %v37_v49 = vld [vmem:[%s926_s0] sm:$0xff] }
   0xc   :  { %v657_v45 = vpack.c.bf16 %v72_v43, %v71_v42  ;;  %v56_v47 = vld [vmem:[%s925_s1 + $0x78] sm:$0xff]  ;;  %v39_v51 = vld [vmem:[%s926_s0 + $0x10] sm:$0xff]  ;;  %v161_v52 = vld [vmem:[%s927_s3] sm:$0xff] }
   0xd   :  { %640 = vmatpush3.bf16.msra.mxu0 %v639_v19  ;;  %v659_v48 = vpack.c.bf16 %v56_v47, %v55_v46  ;;  %v40_v50 = vld [vmem:[%s926_s0 + $0x18] sm:$0xff]  ;;  %v162_v53 = vld [vmem:[%s927_s3 + $0x8] sm:$0xff]  ;;  %v163_v55 = vld [vmem:[%s927_s3 + $0x10] sm:$0xff] }
   0xe   :  { %642 = vmatprep.subr.bf16.mxu0 %v641_v20  ;;  %v661_v54 = vpack.c.bf16 %v162_v53, %v161_v52  ;;  %v164_v56 = vld [vmem:[%s927_s3 + $0x18] sm:$0xff]  ;;  %v529_v59 = vld [vmem:[%s928_s2] ss:$0 sm:$0xff]  ;;  %v263_v8 = vld [vmem:[%s929_s6 + $0x8] sm:$0x3] }
   0xf   :  { %v665_v57 = vpack.c.bf16 %v164_v56, %v163_v55  ;;  %v262_v7 = vld [vmem:[%s929_s6] sm:$0xff]  ;;  %vm877_vm5 = vmpackc.low %vm268_vm3, %vm685_vm4  ;;  %v261_v16 = vld [vmem:[%s931_s5 + $0x8] sm:$0x3] }
  0x10   :  { %662 = vmatprep.subr.bf16.mxu1 %v661_v54  ;;  %v670_v9 = vpack.c.bf16 %v263_v8, %v262_v7  ;;  %v530_v13 = vld [vmem:[%s930_s4] ss:$0 sm:$0xff]  ;;  %v431_v28 = vld [vmem:[%s933_s8 + $0x10] sm:$0xf] }
  0x11   :  { %644 = vmatpush3.bf16.msra.mxu0 %v643_v26  ;;  %664 = vmatpush3.bf16.msra.mxu1 %v661_v54  ;;  %v260_v15 = vld [vmem:[%s931_s5] sm:$0xff]  ;;  %v430_v26 = vld [vmem:[%s933_s8 + $0x8] sm:$0xff] }
  0x12   :  { %646 = vmatprep.subr.bf16.mxu0 %v645_v27  ;;  %666 = vmatprep.subr.bf16.mxu1 %v665_v57  ;;  %v674_v21 = vpack.c.bf16 %v261_v16, %v260_v15  ;;  %v429_v25 = vld [vmem:[%s933_s8] sm:$0xff] }
  0x13   :  { %v678_v27 = vpack.c.bf16 %v430_v26, %v429_v25 }
  0x15   :  { %648 = vmatpush3.bf16.msra.mxu0 %v647_v32  ;;  %668 = vmatpush3.bf16.msra.mxu1 %v665_v57  ;;  %v537_v32 = vld [vmem:[%s934_s7] ss:$0 sm:$0xff] }
  0x16   :  { %650 = vmatprep.subr.bf16.mxu0 %v649_v33  ;;  %669 = vmatprep.subr.bf16.mxu1 %v684_v10 }
  0x19   :  { %652 = vmatpush3.bf16.msra.mxu0 %v651_v38  ;;  %v538_v38 = vld [vmem:[%s935_s9] ss:$0 sm:$0xff] }
  0x1a   :  { %654 = vmatprep.subr.bf16.mxu0 %v653_v39 }
  0x1d   :  { %656 = vmatpush3.bf16.msra.mxu0 %v655_v44 }
  0x1e   :  { %658 = vmatprep.subr.bf16.mxu0 %v657_v45 }
  0x21   :  { %660 = vmatpush3.bf16.msra.mxu0 %v659_v48 }
  0x24   :  { %145 = vmatmul.mubr.f32.vlgmr.msra.gmra.mrb[0].mxu0 %v37_v49 }
  0x25   :  { %149 = vmatprep.mubr.f32.mxu0 %v40_v50 }
  0x28   :  { %150 = vmatmul.mubr.f32.gmra.mrb[2].mxu0 %v39_v51 }
  0xf7   :  { %v573_v58 = vpop.f32.mrb[0].mxu0 }
  0xf8   :  { %v574_v60 = vpop.f32.mrb[1].mxu0 }
  0xf9   :  { %v575_v61 = vadd.f32 %v574_v60, %v573_v58 }
  0xfb   :  { %v147_v62 = vadd.f32 %v575_v61, %v529_v59  ;;  %v576_v63 = vpop.f32.mrb[2].mxu0 }
  0xfc   :  { %v577_v0 = vpop.f32.mrb[3].mxu0 }
  0xfd   :  { %v578_v1 = vadd.f32 %v577_v0, %v576_v63  ;;  %vm155_vm0 = vcmp.ge.f32.partialorder %v147_v62, 0.0  ;;  %v157_v2 = vmul.f32 0.01, %v147_v62 }
  0xff   :  { %v152_v3 = vadd.f32 %v578_v1, %v529_v59  ;;  %v159_v4 = vsel %vm155_vm0, %v147_v62, %v157_v2 }
 0x100   :  { %603 = vmatprep.mubr.msk.f32.mxu1 %vm172_vm1, %v159_v4 }
 0x101   :  { %v158_v5 = vmul.f32 0.01, %v152_v3  ;;  %vm156_vm2 = vcmp.ge.f32.partialorder %v152_v3, 0.0 }
 0x103   :  { %v160_v6 = vsel %vm156_vm2, %v152_v3, %v158_v5 }
 0x104   :  { %604 = vmatmul.mubr.msk.f32.vlgmr.msra.gmra.mrb[0].mxu1 %vm172_vm1, %v160_v6 }
 0x105   :  { %672 = vmatpush3.bf16.msk.msra.mxu1 %vm877_vm5, %v670_v9  ;;  %610 = vmatprep.mubr.msk.f32.mxu1 %vm686_vm6, %v687_v12 }
 0x106   :  { %673 = vmatprep.subr.bf16.mxu1 %v684_v10 }
 0x1d7   :  { %v605_v14 = vpop.f32.mrb[0].mxu1 }
 0x1d8   :  { %v251_v17 = vadd.f32 %v605_v14, %v530_v13  ;;  %v245_v18 = vpop.f32.mrb[1].mxu1 }
 0x1d9   :  { %v246_v19 = vadd.f32 %v530_v13, %v245_v18 }
 0x1da   :  { %v257_v20 = vmul.f32 0.01, %v251_v17  ;;  %vm255_vm8 = vcmp.ge.f32.partialorder %v251_v17, 0.0  ;;  %520 = vst.msk [vmem:[%s932_s11 + $0x8] sm:$0xff] %vm264_vm7, %v251_v17 }
 0x1db   :  { %519 = vst.msk [vmem:[%s932_s11] sm:$0xff] %vm264_vm7, %v246_v19  ;;  %v256_v22 = vmul.f32 0.01, %v246_v19  ;;  %vm254_vm9 = vcmp.ge.f32.partialorder %v246_v19, 0.0 }
 0x1dc   :  { %v259_v23 = vsel %vm255_vm8, %v251_v17, %v257_v20 }
 0x1dd   :  { %611 = vmatmul.mubr.msk.f32.vlgmr.msra.gmra.mrb[2].mxu1 %vm264_vm7, %v259_v23  ;;  %v258_v24 = vsel %vm254_vm9, %v246_v19, %v256_v22 }
 0x1de   :  { %676 = vmatpush3.bf16.msk.msra.mxu1 %vm877_vm5, %v674_v21  ;;  %617 = vmatprep.mubr.msk.f32.mxu1 %vm686_vm6, %v687_v12 }
 0x1df   :  { %677 = vmatprep.subr.bf16.mxu1 %v684_v10 }
 0x1e1   :  { %618 = vmatmul.mubr.msk.f32.vlgmr.msra.gmra.mrb[4].mxu1 %vm264_vm7, %v258_v24 }
 0x1e2   :  { %626 = vmatprep.mubr.msk.f32.mxu1 %vm686_vm6, %v687_v12  ;;  %679 = vmatpush3.bf16.msra.mxu1 %v678_v27 }
 0x1e3   :  { %624 = vmatprep.subr.mxu1 %v687_v12 }
 0x1e6   :  { %625 = vmatpush3.msk.msra.mxu1 %vm443_vm10, %v431_v28 }
 0x2b0   :  { %v338_v29 = vpop.f32.mrb[2].mxu1 }
 0x2b1   :  { %v612_v30 = vpop.f32.mrb[3].mxu1 }
 0x2b4   :  { %v414_v31 = vpop.f32.mrb[4].mxu1 }
 0x2b5   :  { %v415_v33 = vadd.f32 %v414_v31, %v338_v29  ;;  %v619_v34 = vpop.f32.mrb[5].mxu1 }
 0x2b7   :  { %v425_v35 = vadd.f32 %v537_v32, %v415_v33 }
 0x2b9   :  { %vm426_vm11 = vcmp.ge.f32.partialorder %v425_v35, 0.0  ;;  %v427_v36 = vmul.f32 0.01, %v425_v35 }
 0x2bb   :  { %v428_v37 = vsel %vm426_vm11, %v425_v35, %v427_v36 }
 0x2bc   :  { %627 = vmatmul.mubr.msk.f32.vlgmr.msra.gmra.mrb[6].mxu1 %vm439_vm12, %v428_v37 }
 0x38f   :  { %v513_v39 = vpop.f32.mrb[6].mxu1 }
 0x390   :  { %v514_v40 = vadd.f32 %v538_v38, %v513_v39  ;;  %v628_v41 = vpop.f32.mrb[7].mxu1 }
 0x392   :  { %518 = vst.msk [vmem:[%s936_s10] sm:$0xff] %vm517_vm13, %v514_v40 }

</bundles_post_ra>
